<compile_context>
chip_gen: v7x
topology: tpu7x:2x2x1
jax: 0.10.0
libtpu: 0.0.40
codegen_flags: <defaults>
</compile_context>

<pallas_src>
import jax
import jax.numpy as jnp
from jax import lax
from jax.experimental import pallas as pl
from jax.experimental.pallas import tpu as pltpu


def _round_up(x: int, m: int) -> int:
    return (x + m - 1) // m * m


def _vmem_capacity_bytes() -> int:
    """Per-core VMEM capacity; falls back to the smallest generation (v7x) if unknown."""
    try:
        cap = getattr(pltpu.get_tpu_info(), "vmem_capacity_bytes", None)
        if cap:
            return int(cap)
    except Exception:
        pass
    return 64 * 1024 * 1024


def _aligned_tile(s_pad: int, batch: int, max_tokens: int) -> int:
    """Largest token tile T <= max_tokens that is a multiple of 8 and either a multiple
    or a divisor of s_pad, so each tile's positions are one contiguous slice of the
    (padded) position table selectable by a BlockSpec index_map."""
    max_tokens = max(8, max_tokens - max_tokens % 8)
    if s_pad <= max_tokens:
        reps = max(1, min(batch, max_tokens // s_pad))
        return reps * s_pad
    d = max_tokens
    while s_pad % d:
        d -= 8
    return d


# ----------------------------- resident (small-vocab) path -----------------------------

def _resident_kernel(ids_ref, hi_ref, mid_ref, lo_ref, pos_ref, out_ref):
    # ids_ref        : (T, 1)  int32  token ids for this tile
    # hi/mid/lo_ref  : (Vp, D) bf16   exact 3-way split of the f32 token table (resident)
    # pos_ref        : (T, D)         position-embedding slice for this tile's positions
    # out_ref        : (T, D)
    t_tile = out_ref.shape[0]
    vp = hi_ref.shape[0]
    ids = ids_ref[...]                                                    # (T, 1)
    one_hot = (lax.broadcasted_iota(jnp.int32, (t_tile, vp), 1) == ids
               ).astype(jnp.bfloat16)                                     # exact 0/1 in bf16
    acc = jnp.dot(one_hot, hi_ref[...], preferred_element_type=jnp.float32)
    acc = acc + jnp.dot(one_hot, mid_ref[...], preferred_element_type=jnp.float32)
    acc = acc + jnp.dot(one_hot, lo_ref[...], preferred_element_type=jnp.float32)
    out_ref[...] = (acc + pos_ref[...].astype(jnp.float32)).astype(out_ref.dtype)


# ----------------------------- gather (large-vocab) path --------------------------------

def _gather_kernel(ids_ref, tok_hbm_ref, pos_ref, out_ref, row_buf, sem):
    # ids_ref     : (N_pad,) int32 in SMEM (scalar prefetch)
    # tok_hbm_ref : (V, D) token table left in HBM (memory_space=pl.ANY)
    # pos_ref     : (T, D) position slice for this tile
    # out_ref     : (T, D)
    # row_buf     : (T, D) VMEM gather destination
    # sem         : single DMA semaphore shared by the (equal-sized) row copies
    t_tile = out_ref.shape[0]
    base = pl.program_id(0) * t_tile

    def _issue(t, carry):
        tok_id = ids_ref[base + t]
        pltpu.make_async_copy(
            tok_hbm_ref.at[pl.ds(tok_id, 1), :],
            row_buf.at[pl.ds(t, 1), :],
            sem,
        ).start()
        return carry

    def _drain(t, carry):
        pltpu.make_async_copy(
            tok_hbm_ref.at[pl.ds(0, 1), :],
            row_buf.at[pl.ds(t, 1), :],
            sem,
        ).wait()
        return carry

    lax.fori_loop(0, t_tile, _issue, 0)
    lax.fori_loop(0, t_tile, _drain, 0)
    out_ref[...] = (row_buf[...].astype(jnp.float32)
                    + pos_ref[...].astype(jnp.float32)).astype(out_ref.dtype)


# ----------------------------------- wrapper --------------------------------------------

def clip_embeddings(token_ids, tok_table, pos_table, *, tile_tokens=256, force_gather=None):
    """token_ids: [B, S] int; tok_table: [V, D]; pos_table: [S, D] -> [B, S, D]."""
    B, S = token_ids.shape
    V, D = tok_table.shape
    assert pos_table.shape == (S, D)
    out_dtype = tok_table.dtype
    io_bytes = jnp.dtype(out_dtype).itemsize

    # Per-sequence padding: positions of the flattened stream are simply (index % s_pad).
    s_pad = _round_up(S, 8)
    ids = jnp.clip(token_ids.astype(jnp.int32), 0, V - 1)   # bound clamp (Embedding would fault OOB)
    ids = jnp.pad(ids, ((0, 0), (0, s_pad - S)))
    pos_p = jnp.pad(pos_table, ((0, s_pad - S), (0, 0)))

    vmem_cap = _vmem_capacity_bytes()
    budget = int(vmem_cap * 0.7)          # headroom for Mosaic internals / output staging
    v_pad = _round_up(V, 8)

    # Resident-path VMEM footprint: 3 bf16 table splits (x2 for default double buffering),
    # the (T, Vp) iota + bf16 one-hot intermediates, and double-buffered ids/pos/out tiles.
    def resident_bytes(t):
        return (2 * 3 * v_pad * D * 2
                + t * v_pad * (4 + 2)
                + 2 * t * 4
                + 4 * t * D * io_bytes
                + (2 << 20))

    # Choose the token tile, shrinking it until the one-hot intermediates also fit.
    tile_cap = tile_tokens
    t_tile = _aligned_tile(s_pad, B, tile_cap)
    while resident_bytes(t_tile) > budget and t_tile > 8:
        tile_cap = max(8, t_tile // 2)
        t_tile = _aligned_tile(s_pad, B, tile_cap)
    resident_fits = resident_bytes(t_tile) <= budget

    use_gather = (not resident_fits) if force_gather is None else bool(force_gather)
    if use_gather:
        t_tile = _aligned_tile(s_pad, B, tile_tokens)   # no (T, Vp) temporaries on this path
    elif not resident_fits:
        raise ValueError("tables too large for the VMEM-resident path; use force_gather=True/None")

    n_tok = B * s_pad
    n_pad = _round_up(n_tok, t_tile)
    num_tiles = n_pad // t_tile
    ids_flat = jnp.pad(ids.reshape(n_tok), (0, n_pad - n_tok))

    if t_tile >= s_pad:                      # tile spans whole (padded) sequences
        reps = t_tile // s_pad
        pos_blocks = jnp.tile(pos_p, (reps, 1)) if reps > 1 else pos_p   # (T, D), constant block
        n_pos_blocks = 1
    else:                                    # tile is a multiple-of-8 divisor of s_pad
        pos_blocks = pos_p
        n_pos_blocks = s_pad // t_tile

    out_shape = jax.ShapeDtypeStruct((n_pad, D), out_dtype)

    if use_gather:
        if n_pos_blocks == 1:
            pos_map = lambda i, ids_sm: (0, 0)
        else:
            pos_map = lambda i, ids_sm: (i % n_pos_blocks, 0)
        vmem_limit = int(min(vmem_cap - (2 << 20),
                             max(32 << 20, 8 * t_tile * D * io_bytes + (8 << 20))))
        cost = pl.CostEstimate(
            flops=int(n_pad * D),
            transcendentals=0,
            bytes_accessed=int(2 * n_pad * D * io_bytes + s_pad * D * io_bytes + n_pad * 4),
        )
        grid_spec = pltpu.PrefetchScalarGridSpec(
            num_scalar_prefetch=1,
            grid=(num_tiles,),
            in_specs=[
                pl.BlockSpec(memory_space=pl.ANY),                  # token table stays in HBM
                pl.BlockSpec((t_tile, D), pos_map),                 # position slice (auto-pipelined)
            ],
            out_specs=pl.BlockSpec((t_tile, D), lambda i, ids_sm: (i, 0)),
            scratch_shapes=[
                pltpu.VMEM((t_tile, D), tok_table.dtype),
                pltpu.SemaphoreType.DMA(()),
            ],
        )
        out_flat = pl.pallas_call(
            _gather_kernel,
            out_shape=out_shape,
            grid_spec=grid_spec,
            compiler_params=pltpu.CompilerParams(
                dimension_semantics=("parallel",),
                vmem_limit_bytes=vmem_limit,
            ),
            cost_estimate=cost,
        )(ids_flat, tok_table, pos_blocks)
    else:
        # Exact 3-way bf16 split of the f32 token table: hi + mid + lo == table to < 1 f32 ulp,
        # so three DEFAULT-precision bf16 matmuls reproduce the gathered rows exactly with
        # roughly half the MXU passes of a Precision.HIGHEST f32 matmul.
        t32 = tok_table.astype(jnp.float32)
        hi = t32.astype(jnp.bfloat16)
        r1 = t32 - hi.astype(jnp.float32)
        mid = r1.astype(jnp.bfloat16)
        lo = (r1 - mid.astype(jnp.float32)).astype(jnp.bfloat16)
        pad_v = ((0, v_pad - V), (0, 0))
        hi, mid, lo = [jnp.pad(a, pad_v) for a in (hi, mid, lo)]
        ids2d = ids_flat.reshape(n_pad, 1)

        if n_pos_blocks == 1:
            pos_map = lambda i: (0, 0)
        else:
            pos_map = lambda i: (i % n_pos_blocks, 0)
        vmem_limit = int(min(vmem_cap - (2 << 20),
                             max(32 << 20, 2 * resident_bytes(t_tile))))
        cost = pl.CostEstimate(
            flops=int(2 * n_pad * 3 * v_pad * D + n_pad * D),
            transcendentals=0,
            bytes_accessed=int(3 * v_pad * D * 2 + s_pad * D * io_bytes
                               + n_pad * D * io_bytes + n_pad * 4),
        )
        grid_spec = pltpu.PrefetchScalarGridSpec(
            num_scalar_prefetch=0,
            grid=(num_tiles,),
            in_specs=[
                pl.BlockSpec((t_tile, 1), lambda i: (i, 0)),     # token ids tile
                pl.BlockSpec((v_pad, D), lambda i: (0, 0)),      # hi split (resident, DMA'd once)
                pl.BlockSpec((v_pad, D), lambda i: (0, 0)),      # mid split
                pl.BlockSpec((v_pad, D), lambda i: (0, 0)),      # lo split
                pl.BlockSpec((t_tile, D), pos_map),              # position slice for this tile
            ],
            out_specs=pl.BlockSpec((t_tile, D), lambda i: (i, 0)),
        )
        # TODO(synk): single-buffer the three constant-index resident table specs via
        # pipeline_mode=pl.Buffered(1) once verified on the target JAX version (halves
        # their VMEM footprint; the 2x is already accounted for in resident_bytes).
        out_flat = pl.pallas_call(
            _resident_kernel,
            out_shape=out_shape,
            grid_spec=grid_spec,
            compiler_params=pltpu.CompilerParams(
                dimension_semantics=("parallel",),
                vmem_limit_bytes=vmem_limit,
            ),
            cost_estimate=cost,
        )(ids2d, hi, mid, lo, pos_blocks)

    return out_flat[:n_tok].reshape(B, s_pad, D)[:, :S, :]


if __name__ == "__main__":
    # Small, CLIP-like shapes.
    batch = 2
    vocab_size = 64
    max_sequence_length = 8
    embed_dim = 128

    key = jax.random.PRNGKey(0)
    k_tok, k_pos, k_ids = jax.random.split(key, 3)

    tok_table = jax.random.normal(k_tok, (vocab_size, embed_dim), dtype=jnp.float32)
    pos_table = jax.random.normal(k_pos, (max_sequence_length, embed_dim), dtype=jnp.float32)
    token_ids = jax.random.randint(
        k_ids, (batch, max_sequence_length), 0, vocab_size, dtype=jnp.int32
    )

    # Reference (same semantics as the PyTorch forward).
    ref = tok_table[token_ids] + pos_table[None, :, :]

    # Small-vocab VMEM-resident path.
    out_resident = jax.block_until_ready(
        clip_embeddings(token_ids, tok_table, pos_table, force_gather=False))
    assert out_resident.shape == (batch, max_sequence_length, embed_dim)
    assert jnp.allclose(out_resident, ref, atol=1e-5, rtol=1e-5), "resident path mismatch"

    # Production (large-vocab) row-gather path, exercised on the same small shapes.
    out_gather = jax.block_until_ready(
        clip_embeddings(token_ids, tok_table, pos_table, force_gather=True))
    assert out_gather.shape == (batch, max_sequence_length, embed_dim)
    assert jnp.allclose(out_gather, ref, atol=1e-5, rtol=1e-5), "gather path mismatch"

    print("KERNEL_OK")
</pallas_src>

<mosaic_0001>
module attributes {stable_mosaic.version = 11 : i64} {
  func.func @_resident_kernel(%arg0: i32, %arg1: memref<16x1xi32, #tpu.memory_space<vmem>>, %arg2: memref<64x128xbf16, #tpu.memory_space<vmem>>, %arg3: memref<64x128xbf16, #tpu.memory_space<vmem>>, %arg4: memref<64x128xbf16, #tpu.memory_space<vmem>>, %arg5: memref<16x128xf32, #tpu.memory_space<vmem>>, %arg6: memref<16x128xf32, #tpu.memory_space<vmem>>) attributes {dimension_semantics = [#tpu.dimension_semantics<parallel>], iteration_bounds = array<i64: 1>, scalar_prefetch = 0 : i64, scratch_operands = 0 : i64, tpu.core_type = #tpu.core_type<tc>, window_params = [{transform_indices = @transform_0, window_bounds = array<i64: 16, 1>}, {pipeline_mode = #tpu.pipeline_mode<synchronous>, transform_indices = @transform_1, window_bounds = array<i64: 64, 128>}, {pipeline_mode = #tpu.pipeline_mode<synchronous>, transform_indices = @transform_2, window_bounds = array<i64: 64, 128>}, {pipeline_mode = #tpu.pipeline_mode<synchronous>, transform_indices = @transform_3, window_bounds = array<i64: 64, 128>}, {pipeline_mode = #tpu.pipeline_mode<synchronous>, transform_indices = @transform_4, window_bounds = array<i64: 16, 128>}, {transform_indices = @transform_5, window_bounds = array<i64: 16, 128>}]} {
    %c0 = arith.constant 0 : index
    %c0_0 = arith.constant 0 : index
    %0 = vector.load %arg1[%c0, %c0_0] : memref<16x1xi32, #tpu.memory_space<vmem>>, vector<16x1xi32>
    %1 = tpu.iota {dimensions = array<i32: 1>} : vector<16x64xi32>
    %2 = vector.broadcast %0 : vector<16x1xi32> to vector<16x64xi32>
    %3 = arith.cmpi eq, %1, %2 : vector<16x64xi32>
    %4 = arith.extui %3 : vector<16x64xi1> to vector<16x64xi32>
    %5 = arith.sitofp %4 : vector<16x64xi32> to vector<16x64xf32>
    %6 = arith.truncf %5 : vector<16x64xf32> to vector<16x64xbf16>
    %c0_1 = arith.constant 0 : index
    %c0_2 = arith.constant 0 : index
    %7 = vector.load %arg2[%c0_1, %c0_2] : memref<64x128xbf16, #tpu.memory_space<vmem>>, vector<64x128xbf16>
    %cst = arith.constant dense<0.000000e+00> : vector<16x128xf32>
    %8 = tpu.matmul %6, %7, %cst {dimension_numbers = #tpu.dot_dimension_numbers<[1], [0], [0], [1], [0, 0, 1, 1], [], []>} : vector<16x64xbf16>, vector<64x128xbf16>, vector<16x128xf32> -> vector<16x128xf32>
    %c0_3 = arith.constant 0 : index
    %c0_4 = arith.constant 0 : index
    %9 = vector.load %arg3[%c0_3, %c0_4] : memref<64x128xbf16, #tpu.memory_space<vmem>>, vector<64x128xbf16>
    %cst_5 = arith.constant dense<0.000000e+00> : vector<16x128xf32>
    %10 = tpu.matmul %6, %9, %cst_5 {dimension_numbers = #tpu.dot_dimension_numbers<[1], [0], [0], [1], [0, 0, 1, 1], [], []>} : vector<16x64xbf16>, vector<64x128xbf16>, vector<16x128xf32> -> vector<16x128xf32>
    %11 = arith.addf %8, %10 : vector<16x128xf32>
    %c0_6 = arith.constant 0 : index
    %c0_7 = arith.constant 0 : index
    %12 = vector.load %arg4[%c0_6, %c0_7] : memref<64x128xbf16, #tpu.memory_space<vmem>>, vector<64x128xbf16>
    %cst_8 = arith.constant dense<0.000000e+00> : vector<16x128xf32>
    %13 = tpu.matmul %6, %12, %cst_8 {dimension_numbers = #tpu.dot_dimension_numbers<[1], [0], [0], [1], [0, 0, 1, 1], [], []>} : vector<16x64xbf16>, vector<64x128xbf16>, vector<16x128xf32> -> vector<16x128xf32>
    %14 = arith.addf %11, %13 : vector<16x128xf32>
    %c0_9 = arith.constant 0 : index
    %c0_10 = arith.constant 0 : index
    %15 = vector.load %arg5[%c0_9, %c0_10] : memref<16x128xf32, #tpu.memory_space<vmem>>, vector<16x128xf32>
    %16 = arith.addf %14, %15 : vector<16x128xf32>
    %c0_11 = arith.constant 0 : index
    %c0_12 = arith.constant 0 : index
    %17 = vector.load %arg6[%c0_11, %c0_12] : memref<16x128xf32, #tpu.memory_space<vmem>>, vector<16x128xf32>
    tpu.vector_store %arg6[%c0_11, %c0_12], %16 {strides = array<i32>} : memref<16x128xf32, #tpu.memory_space<vmem>>, vector<16x128xf32>,
    return
  }
  func.func @transform_0(%arg0: i32) -> (i32, i32) {
    %c0_i32 = arith.constant 0 : i32
    %c0_i32_0 = arith.constant 0 : i32
    return %arg0, %c0_i32 : i32, i32
  }
  func.func @transform_1(%arg0: i32) -> (i32, i32) {
    %c0_i32 = arith.constant 0 : i32
    %c0_i32_0 = arith.constant 0 : i32
    %c0_i32_1 = arith.constant 0 : i32
    return %c0_i32, %c0_i32_0 : i32, i32
  }
  func.func @transform_2(%arg0: i32) -> (i32, i32) {
    %c0_i32 = arith.constant 0 : i32
    %c0_i32_0 = arith.constant 0 : i32
    %c0_i32_1 = arith.constant 0 : i32
    return %c0_i32, %c0_i32_0 : i32, i32
  }
  func.func @transform_3(%arg0: i32) -> (i32, i32) {
    %c0_i32 = arith.constant 0 : i32
    %c0_i32_0 = arith.constant 0 : i32
    %c0_i32_1 = arith.constant 0 : i32
    return %c0_i32, %c0_i32_0 : i32, i32
  }
  func.func @transform_4(%arg0: i32) -> (i32, i32) {
    %c0_i32 = arith.constant 0 : i32
    %c0_i32_0 = arith.constant 0 : i32
    %c0_i32_1 = arith.constant 0 : i32
    return %c0_i32, %c0_i32_0 : i32, i32
  }
  func.func @transform_5(%arg0: i32) -> (i32, i32) {
    %c0_i32 = arith.constant 0 : i32
    %c0_i32_0 = arith.constant 0 : i32
    return %arg0, %c0_i32 : i32, i32
  }
}

</mosaic_0001>

<bundles_post_ra>
// kernel: tpu_custom_call.1
= control target key start
LH: loop header
LB: loop body
LE: loop exit
PB: predicated region body
PF: predicated region fallthrough
CT: control target
= control target key end

     0   :  { %10 = vsyncpa [#allocation3], 0  ;;  %s638_s0 = inlined_call_operand.vmem [shape: s32[16,1], index: 0, kind: input, shape index: {}]   ;;  %s639_s1 = inlined_call_operand.hbm [shape: bf16[64,128], index: 1, kind: input, shape index: {}]   ;;  %s640_s2 = inlined_call_operand.hbm [shape: bf16[64,128], index: 2, kind: input, shape index: {}]   ;;  %s641_s3 = inlined_call_operand.hbm [shape: bf16[64,128], index: 3, kind: input, shape index: {}]   ;;  %s642_s4 = inlined_call_operand.vmem [shape: f32[16,128], index: 4, kind: input, shape index: {}]   ;;  %s643_s5 = inlined_call_operand.hbm [shape: f32[16,128], index: 5, kind: output, shape index: {}]  }
   0x1   :  { %11 = vsyncpa [#allocation6], 0 }
   0x2   :  { %12 = vsyncpa [#allocation4], 0  ;;  %s515_s18 = smov [#allocation5]   ;;  %s516_s20 = smov [#allocation2]  }
   0x3   :  { %s32_s19 = sshll.u32 %s515_s18, 4  ;;  %s20_s21 = sshll.u32 %s516_s20, 4  ;;  %s33_s19 = int_to_ptr.vmem [resolvable:$true] %s32_s19  ;;  %s556_s21 = int_to_ptr.vmem [resolvable:$true] %s20_s21 }
   0x4   :  { %s421_s24 = scalar_lea.hbm %s640_s2, 512 }
   0x5   :  { %p422_p0 = scmp.ne.s32.totalorder %s640_s2, %s421_s24  ;;  %p425_p1 = scmp.lt.u32.totalorder %s421_s24, %s640_s2 }
   0x7   :  { %p427_p2 = pnand %p425_p1, %p422_p0 }
   0x9   :  { %430 = shalt.err (!%p427_p2)
}
   0xa   :  { %s431_s29 = scalar_lea.vmem %s33_s19, 512  ;;  %p436_p4 = scmp.lt.s32.totalorder %s33_s19, %s33_s19 }
   0xb   :  { %p432_p3 = scmp.ne.s32.totalorder %s33_s19, %s431_s29  ;;  %p437_p5 = scmp.lt.s32.totalorder %s431_s29, %s431_s29 }
   0xd   :  { %p438_p6 = por %p437_p5, %p436_p4 }
   0xf   :  { %p439_p7 = pnand %p438_p6, %p432_p3 }
  0x11   :  { %442 = shalt.err (!%p439_p7)
}
  0x12   :  { %s517_s30 = smov 64   ;;  %s518_s6 = smov 4  }
  0x13   :  { %38 = dma.hbm_to_vmem [thread:$0]  %s640_s2, 512, %s33_s19, [#allocation6], %s517_s30, %s517_s30, %s518_s6  }
  0x14   :  { %s443_s11 = scalar_lea.hbm %s639_s1, 512 }
  0x15   :  { %p444_p8 = scmp.ne.s32.totalorder %s639_s1, %s443_s11  ;;  %p447_p9 = scmp.lt.u32.totalorder %s443_s11, %s639_s1 }
  0x17   :  { %p449_p10 = pnand %p447_p9, %p444_p8 }
  0x19   :  { %452 = shalt.err (!%p449_p10)
}
  0x1a   :  { %s453_s16 = scalar_lea.vmem %s556_s21, 512  ;;  %p458_p12 = scmp.lt.s32.totalorder %s556_s21, %s556_s21 }
  0x1b   :  { %p454_p11 = scmp.ne.s32.totalorder %s556_s21, %s453_s16  ;;  %p459_p13 = scmp.lt.s32.totalorder %s453_s16, %s453_s16 }
  0x1d   :  { %p460_p0 = por %p459_p13, %p458_p12 }
  0x1f   :  { %p461_p1 = pnand %p460_p0, %p454_p11 }
  0x21   :  { %464 = shalt.err (!%p461_p1)
}
  0x22   :  { %26 = dma.hbm_to_vmem [thread:$0]  %s639_s1, 512, %s556_s21, [#allocation3], %s517_s30, %s517_s30, %s518_s6  }
  0x23   :  { %s519_s18 = smov [#allocation7]   ;;  %s465_s23 = scalar_lea.hbm %s641_s3, 512 }
  0x24   :  { %s44_s19 = sshll.u32 %s519_s18, 4  ;;  %p466_p2 = scmp.ne.s32.totalorder %s641_s3, %s465_s23  ;;  %s45_s19 = int_to_ptr.vmem [resolvable:$true] %s44_s19 }
  0x25   :  { %p469_p3 = scmp.lt.u32.totalorder %s465_s23, %s641_s3 }
  0x27   :  { %p471_p4 = pnand %p469_p3, %p466_p2 }
  0x29   :  { %474 = shalt.err (!%p471_p4)
}
  0x2a   :  { %s475_s28 = scalar_lea.vmem %s45_s19, 512  ;;  %p480_p6 = scmp.lt.s32.totalorder %s45_s19, %s45_s19 }
  0x2b   :  { %p476_p5 = scmp.ne.s32.totalorder %s45_s19, %s475_s28  ;;  %p481_p7 = scmp.lt.s32.totalorder %s475_s28, %s475_s28 }
  0x2d   :  { %p482_p8 = por %p481_p7, %p480_p6 }
  0x2f   :  { %p483_p9 = pnand %p482_p8, %p476_p5 }
  0x31   :  { %486 = shalt.err (!%p483_p9)
}
  0x32   :  { %50 = dma.hbm_to_vmem [thread:$0]  %s641_s3, 512, %s45_s19, [#allocation6], %s517_s30, %s517_s30, %s518_s6  }
  0x33   :  { %509 = dma.done.wait [#allocation3], 512  }
  0x34   :  { %510 = vsyncadd [#allocation3], 4294966784 }
  0x35   :  { %511 = dma.done.wait [#allocation6], 1024  }
  0x36   :  { %512 = vsyncadd [#allocation6], 4294966272  ;;  %v520_v0 = vmov 0   ;;  %v521_v1 = vmov 0.0   ;;  %v63_v2 = vld [vmem:[%s638_s0] sm:$0xff]  ;;  %v64_v3 = vld [vmem:[%s638_s0 + $0x8] sm:$0xff]  ;;  %v65_v12 = vlaneseq }
  0x37   :  { %408 = vset.pattern.permute.xlu0 %v520_v0  ;;  %361 = vmatprep.subr.bf16.mxu0 %v521_v1  ;;  %v409_v4 = vld [vmem:[#allocation5] sm:$0xff]   ;;  %v411_v6 = vld [vmem:[#allocation5 + $0x8] sm:$0xff]   ;;  %v413_v8 = vld [vmem:[#allocation5 + $0x10] sm:$0xff]   ;;  %vm522_vm0 = vmmov 0   ;;  %vm120_vm3 = vcmask 523264   ;;  %s523_s30 = smov [#allocation8]  }
  0x38   :  { %373 = vmatprep.subr.bf16.mxu1 %v521_v1  ;;  %68 = vperm.xlu0 %408, %v63_v2   ;;  %v410_v5 = vld [vmem:[#allocation2] sm:$0xff]   ;;  %v412_v7 = vld [vmem:[#allocation2 + $0x8] sm:$0xff]   ;;  %v414_v9 = vld [vmem:[#allocation2 + $0x10] sm:$0xff]   ;;  %v66_v13 = vand.u32 127, %v65_v12  ;;  %s316_s6 = sshll.u32 %s523_s30, 4  ;;  %s317_s6 = int_to_ptr.vmem [resolvable:$true] %s316_s6 }
  0x39   :  { %362 = vmatpush3.bf16.msra.mxu0 %v409_v4  ;;  %374 = vmatpush3.bf16.msra.mxu1 %v410_v5  ;;  %v415_v10 = vld [vmem:[#allocation5 + $0x18] sm:$0xff]   ;;  %v417_v18 = vld [vmem:[#allocation7] sm:$0xff]   ;;  %v418_v20 = vld [vmem:[#allocation7 + $0x8] sm:$0xff]   ;;  %s487_s12 = scalar_lea.vmem %s317_s6, 256  ;;  %p492_p11 = scmp.lt.s32.totalorder %s317_s6, %s317_s6 }
  0x3a   :  { %363 = vmatprep.subr.bf16.mxu0 %v521_v1  ;;  %375 = vmatprep.subr.bf16.mxu1 %v521_v1  ;;  %v416_v11 = vld [vmem:[#allocation2 + $0x18] sm:$0xff]   ;;  %v419_v21 = vld [vmem:[#allocation7 + $0x10] sm:$0xff]   ;;  %p488_p10 = scmp.ne.s32.totalorder %s317_s6, %s487_s12  ;;  %p493_p12 = scmp.lt.s32.totalorder %s487_s12, %s487_s12 }
  0x3b   :  { %369 = vmatprep.mubr.msk.bf16.mxu0 %vm522_vm0, %v521_v1  ;;  %381 = vmatprep.mubr.msk.bf16.mxu1 %vm522_vm0, %v521_v1  ;;  %v420_v22 = vld [vmem:[#allocation7 + $0x18] sm:$0xff]   ;;  %v305_v34 = vld [vmem:[%s642_s4] sm:$0xff] }
  0x3c   :  { %71 = vperm.xlu0 %408, %v64_v3   ;;  %v306_v38 = vld [vmem:[%s642_s4 + $0x8] sm:$0xff]  ;;  %p494_p13 = por %p493_p12, %p492_p11 }
  0x3d   :  { %364 = vmatpush3.bf16.msra.mxu0 %v411_v6  ;;  %376 = vmatpush3.bf16.msra.mxu1 %v412_v7 }
  0x3e   :  { %365 = vmatprep.subr.bf16.mxu0 %v521_v1  ;;  %377 = vmatprep.subr.bf16.mxu1 %v521_v1  ;;  %p495_p0 = pnand %p494_p13, %p488_p10 }
  0x41   :  { %366 = vmatpush3.bf16.msra.mxu0 %v413_v8  ;;  %378 = vmatpush3.bf16.msra.mxu1 %v414_v9 }
  0x42   :  { %367 = vmatprep.subr.bf16.mxu0 %v521_v1  ;;  %379 = vmatprep.subr.bf16.mxu1 %v521_v1 }
  0x45   :  { %368 = vmatpush3.bf16.msra.mxu0 %v415_v10  ;;  %380 = vmatpush3.bf16.msra.mxu1 %v416_v11 }
  0x46   :  { %385 = vmatprep.subr.bf16.mxu0 %v521_v1 }
  0xb7   :  { %v69_v14 = vpop.permute.xlu0 %68 }
  0xb8   :  { %vm73_vm1 = vcmp.eq.s32.totalorder %v66_v13, %v69_v14 }
  0xb9   :  { %v329_v16 = vsel %vm73_vm1, 1.0, %v521_v1 }
  0xbb   :  { %v72_v15 = vpop.permute.xlu0 %71 }
  0xbc   :  { %vm74_vm2 = vcmp.eq.s32.totalorder %v66_v13, %v72_v15 }
  0xbd   :  { %v330_v17 = vsel %vm74_vm2, 1.0, %v521_v1 }
  0xbe   :  { %v79_v19 = vpack.c.bf16 %v330_v17, %v329_v16 }
  0xc0   :  { %370 = vmatmul.mubr.msk.bf16.vlgmr.msra.gmra.mrb[0].mxu0 %vm120_vm3, %v79_v19  ;;  %382 = vmatmul.mubr.msk.bf16.vlgmr.msra.gmra.mrb[0].mxu1 %vm120_vm3, %v79_v19 }
  0xc1   :  { %386 = vmatpush3.bf16.msra.mxu0 %v417_v18  ;;  %393 = vmatprep.mubr.msk.bf16.mxu0 %vm522_vm0, %v521_v1 }
  0xc2   :  { %387 = vmatprep.subr.bf16.mxu0 %v521_v1 }
  0xc5   :  { %388 = vmatpush3.bf16.msra.mxu0 %v418_v20 }
  0xc6   :  { %389 = vmatprep.subr.bf16.mxu0 %v521_v1 }
  0xc9   :  { %390 = vmatpush3.bf16.msra.mxu0 %v419_v21 }
  0xca   :  { %391 = vmatprep.subr.bf16.mxu0 %v521_v1 }
  0xcd   :  { %392 = vmatpush3.bf16.msra.mxu0 %v420_v22 }
  0xd0   :  { %394 = vmatmul.mubr.msk.bf16.vlgmr.msra.gmra.mrb[4].mxu0 %vm120_vm3, %v79_v19 }
 0x193   :  { %v158_v23 = vpop.f32.mrb[0].mxu0  ;;  %v223_v24 = vpop.f32.mrb[0].mxu1 }
 0x194   :  { %v224_v25 = vadd.f32 %v223_v24, %v158_v23  ;;  %v371_v26 = vpop.f32.mrb[1].mxu0  ;;  %v383_v27 = vpop.f32.mrb[1].mxu1 }
 0x195   :  { %v161_v28 = vpop.f32.mrb[2].mxu0  ;;  %v226_v29 = vpop.f32.mrb[2].mxu1 }
 0x196   :  { %v227_v30 = vadd.f32 %v226_v29, %v161_v28  ;;  %v372_v31 = vpop.f32.mrb[3].mxu0  ;;  %v384_v32 = vpop.f32.mrb[3].mxu1 }
 0x1a3   :  { %v296_v33 = vpop.f32.mrb[4].mxu0 }
 0x1a4   :  { %v303_v35 = vadd.f32 %v296_v33, %v224_v25  ;;  %v395_v36 = vpop.f32.mrb[5].mxu0 }
 0x1a5   :  { %v299_v37 = vpop.f32.mrb[6].mxu0 }
 0x1a6   :  { %v307_v39 = vadd.f32 %v305_v34, %v303_v35  ;;  %v304_v40 = vadd.f32 %v299_v37, %v227_v30  ;;  %v396_v41 = vpop.f32.mrb[7].mxu0 }
 0x1a8   :  { %309 = vst [vmem:[#allocation8] sm:$0xff] %v307_v39  ;;  %v308_v42 = vadd.f32 %v306_v38, %v304_v40 }
 0x1aa   :  { %310 = vst [vmem:[#allocation8 + $0x8] sm:$0xff] %v308_v42 }
 0x1ab   :  { %498 = shalt.err (!%p495_p0)
}
 0x1ac   :  { %s499_s15 = scalar_lea.hbm %s643_s5, 256 }
 0x1ad   :  { %p500_p1 = scmp.ne.s32.totalorder %s643_s5, %s499_s15  ;;  %p503_p2 = scmp.lt.u32.totalorder %s499_s15, %s643_s5 }
 0x1af   :  { %p505_p3 = pnand %p503_p2, %p500_p1 }
 0x1b1   :  { %508 = shalt.err (!%p505_p3)
}
 0x1b2   :  { %s524_s18 = smov 128   ;;  %s525_s19 = smov 8  }
 0x1b3   :  { %322 = dma.vmem_to_hbm [thread:$0]  %s317_s6, 256, %s643_s5, [#allocation4], %s524_s18, %s524_s18, %s525_s19  }
 0x1b4   :  { %513 = dma.done.wait [#allocation4], 256  }
 0x1b5   :  { %514 = vsyncadd [#allocation4], 4294967040 }
 0x1b6   :  { %326 = vsyncpa [#allocation3], 1 }
 0x1b7   :  { %327 = vsyncpa [#allocation6], 1 }
 0x1b8   :  { %328 = vsyncpa [#allocation4], 1 }

</bundles_post_ra>
